<compile_context>
chip_gen: v6e
topology: v6e:2x2x1
jax: 0.10.0
libtpu: 0.0.40
codegen_flags: <defaults>
</compile_context>

<pallas_src>
import functools

import jax
import jax.numpy as jnp
from jax.experimental import pallas as pl
from jax.experimental.pallas import tpu as pltpu

PAD = 128  # lane-dense padded feature width for every hidden layer

# ReLU per layer: layers 1,2,4,5 -> ReLU; layer3 -> Dropout (identity in eval);
# layer6 -> plain Linear.
_RELU_FLAGS = (True, True, False, True, True, False)


def _round_up(n, m):
    return ((n + m - 1) // m) * m


def _batch_net_kernel(x_ref, w_ref, b_ref, o_ref, *, in_dim, out_dim, ep_dtype):
    """Runs the whole 6-layer MLP on one (bm, ...) batch tile in VMEM.

    x_ref : (bm, in_dim)   f32   raw (un-padded) input features
    w_ref : (6, PAD, PAD)  bf16  BN-folded, zero-padded weights (resident)
    b_ref : (6, PAD)       bf16  BN-folded, zero-padded biases  (resident)
    o_ref : (bm, out_dim)  f32   final linear output
    """
    h = x_ref[...].astype(jnp.bfloat16)                      # (bm, in_dim)
    for li in range(5):                                      # layers 1..5, unrolled
        if li == 0:
            # Contract only the real input features (padded rows are zero anyway).
            w = w_ref[0, :in_dim, :]                         # (in_dim, PAD)
        else:
            w = w_ref[li]                                    # (PAD, PAD)
        y = jnp.dot(h, w, preferred_element_type=jnp.float32)    # MXU, f32 acc
        y = y.astype(ep_dtype) + b_ref[pl.ds(li, 1), :].astype(ep_dtype)
        if _RELU_FLAGS[li]:
            y = jnp.maximum(y, 0.0)
        h = y.astype(jnp.bfloat16)                           # feed next MXU pass
    # Layer 6: plain Linear, f32 epilogue, store only the real output columns.
    y = jnp.dot(h, w_ref[5], preferred_element_type=jnp.float32)
    y = y + b_ref[pl.ds(5, 1), :].astype(jnp.float32)
    o_ref[...] = y[:, :out_dim]


def batch_net_forward(x, stacked_w, stacked_b, *, out_dim, bm=None,
                      bf16_epilogue=True):
    """x: (B, in_dim) f32  ->  (B, out_dim) f32.

    bm=None -> single grid step over the whole (row-padded) batch.
    bf16_epilogue=True is best on v6e/v7x; pass False on v5e (no bf16 VPU).
    """
    B, in_dim = x.shape
    assert in_dim <= PAD and out_dim <= PAD
    if bm is None:
        bm = _round_up(B, 8)                  # one grid step by default
    bm = _round_up(bm, 8)
    Bp = _round_up(B, bm)
    if Bp != B:                               # pad rows only when actually needed
        x = jnp.pad(x, ((0, Bp - B), (0, 0)))

    kernel = functools.partial(
        _batch_net_kernel, in_dim=in_dim, out_dim=out_dim,
        ep_dtype=jnp.bfloat16 if bf16_epilogue else jnp.float32)

    out = pl.pallas_call(
        kernel,
        out_shape=jax.ShapeDtypeStruct((Bp, out_dim), jnp.float32),
        grid_spec=pl.GridSpec(
            grid=(Bp // bm,),
            in_specs=[
                pl.BlockSpec((bm, in_dim), lambda i: (i, 0)),       # batch tile (raw f32)
                pl.BlockSpec((6, PAD, PAD), lambda i: (0, 0, 0)),   # all weights, resident
                pl.BlockSpec((6, PAD), lambda i: (0, 0)),           # all biases, resident
            ],
            out_specs=pl.BlockSpec((bm, out_dim), lambda i: (i, 0)),
        ),
        compiler_params=pltpu.CompilerParams(
            dimension_semantics=("parallel",)),
    )(x, stacked_w, stacked_b)
    return out if Bp == B else out[:B]


def init_batch_net_params(key, in_dim, h1, h2, h3, h4, h5, out_dim):
    """Synthetic Batch_Net params with BN (eval mode) folded into (W', b')."""
    dims = [in_dim, h1, h2, h3, h4, h5, out_dim]
    eps = 1e-5
    folded = []
    for li in range(6):
        din, dout = dims[li], dims[li + 1]
        key, kw, kb, kg, kbe, km, kv = jax.random.split(key, 7)
        # NOTE: (din, dout) layout == transpose of PyTorch nn.Linear.weight.
        w = jax.random.normal(kw, (din, dout), jnp.float32) * 0.1
        b = jax.random.normal(kb, (dout,), jnp.float32) * 0.1
        if li < 5:
            gamma = 1.0 + 0.1 * jax.random.normal(kg, (dout,), jnp.float32)
            beta = 0.1 * jax.random.normal(kbe, (dout,), jnp.float32)
            mean = 0.1 * jax.random.normal(km, (dout,), jnp.float32)
            var = 1.0 + 0.1 * jax.random.uniform(kv, (dout,), jnp.float32)
            scale = gamma / jnp.sqrt(var + eps)
            shift = beta - mean * scale
        else:
            scale = jnp.ones((dout,), jnp.float32)
            shift = jnp.zeros((dout,), jnp.float32)
        w_f = w * scale[None, :]            # fold BN scale into weight columns
        b_f = b * scale + shift             # fold BN scale/shift into bias
        folded.append((w_f, b_f))
    return folded


def pack_params(folded):
    """Zero-pad each folded layer to (PAD, PAD)/(PAD,) and stack for the kernel."""
    ws, bs = [], []
    for w_f, b_f in folded:
        din, dout = w_f.shape               # (din, dout): transpose torch weights first!
        wp = jnp.zeros((PAD, PAD), jnp.float32).at[:din, :dout].set(w_f)
        bp = jnp.zeros((PAD,), jnp.float32).at[:dout].set(b_f)
        ws.append(wp)
        bs.append(bp)
    stacked_w = jnp.stack(ws).astype(jnp.bfloat16)   # (6, PAD, PAD) bf16
    stacked_b = jnp.stack(bs).astype(jnp.bfloat16)   # (6, PAD)      bf16
    return stacked_w, stacked_b


def batch_net_reference(x, folded):
    """Pure-JAX f32 reference of the same eval-mode forward pass."""
    h = x
    for (w_f, b_f), relu in zip(folded, _RELU_FLAGS):
        h = h @ w_f + b_f
        if relu:
            h = jnp.maximum(h, 0.0)
    return h


if __name__ == "__main__":
    # Shapes consistent with the module: 6 Linear layers, small hidden dims.
    in_dim, h1, h2, h3, h4, h5, out_dim = 16, 32, 32, 32, 32, 32, 8
    batch = 256  # single fused grid step (bm = 256); use bm=128 per core on v7x

    key = jax.random.PRNGKey(0)
    key, kx = jax.random.split(key)
    x = jax.random.normal(kx, (batch, in_dim), jnp.float32)

    folded = init_batch_net_params(key, in_dim, h1, h2, h3, h4, h5, out_dim)
    stacked_w, stacked_b = pack_params(folded)

    out = batch_net_forward(x, stacked_w, stacked_b, out_dim=out_dim)
    out = jax.block_until_ready(out)

    ref = batch_net_reference(x, folded)
    assert out.shape == (batch, out_dim)
    # bf16 MXU operands / bf16 epilogue with f32 accumulation vs pure-f32 reference.
    assert jnp.allclose(out, ref, atol=5e-2, rtol=5e-2), "mismatch vs reference"

    print("KERNEL_OK")
</pallas_src>

<mosaic_0001>
module attributes {stable_mosaic.version = 11 : i64} {
  func.func @_batch_net_kernel(%arg0: i32, %arg1: memref<256x16xf32, #tpu.memory_space<vmem>>, %arg2: memref<6x128x128xbf16, #tpu.memory_space<vmem>>, %arg3: memref<6x128xbf16, #tpu.memory_space<vmem>>, %arg4: memref<256x8xf32, #tpu.memory_space<vmem>>) attributes {dimension_semantics = [#tpu.dimension_semantics<parallel>], iteration_bounds = array<i64: 1>, scalar_prefetch = 0 : i64, scratch_operands = 0 : i64, tpu.core_type = #tpu.core_type<tc>, window_params = [{transform_indices = @transform_0, window_bounds = array<i64: 256, 16>}, {pipeline_mode = #tpu.pipeline_mode<synchronous>, transform_indices = @transform_1, window_bounds = array<i64: 6, 128, 128>}, {pipeline_mode = #tpu.pipeline_mode<synchronous>, transform_indices = @transform_2, window_bounds = array<i64: 6, 128>}, {transform_indices = @transform_3, window_bounds = array<i64: 256, 8>}]} {
    %c0 = arith.constant 0 : index
    %c0_0 = arith.constant 0 : index
    %0 = vector.load %arg1[%c0, %c0_0] : memref<256x16xf32, #tpu.memory_space<vmem>>, vector<256x16xf32>
    %1 = arith.truncf %0 : vector<256x16xf32> to vector<256x16xbf16>
    %c0_1 = arith.constant 0 : index
    %c0_2 = arith.constant 0 : index
    %c0_3 = arith.constant 0 : index
    %2 = vector.load %arg2[%c0_1, %c0_2, %c0_3] : memref<6x128x128xbf16, #tpu.memory_space<vmem>>, vector<1x16x128xbf16>
    %3 = vector.shape_cast %2 : vector<1x16x128xbf16> to vector<16x128xbf16>
    %cst = arith.constant dense<0.000000e+00> : vector<256x128xf32>
    %4 = tpu.matmul %1, %3, %cst {dimension_numbers = #tpu.dot_dimension_numbers<[1], [0], [0], [1], [0, 0, 1, 1], [], []>} : vector<256x16xbf16>, vector<16x128xbf16>, vector<256x128xf32> -> vector<256x128xf32>
    %5 = arith.truncf %4 : vector<256x128xf32> to vector<256x128xbf16>
    %c0_4 = arith.constant 0 : index
    %c0_5 = arith.constant 0 : index
    %6 = vector.load %arg3[%c0_4, %c0_5] : memref<6x128xbf16, #tpu.memory_space<vmem>>, vector<1x128xbf16>
    %7 = vector.broadcast %6 : vector<1x128xbf16> to vector<256x128xbf16>
    %8 = arith.addf %5, %7 : vector<256x128xbf16>
    %cst_6 = arith.constant 0.000000e+00 : bf16
    %9 = vector.broadcast %cst_6 : bf16 to vector<256x128xbf16>
    %10 = arith.maximumf %8, %9 : vector<256x128xbf16>
    %c1 = arith.constant 1 : index
    %c0_7 = arith.constant 0 : index
    %c0_8 = arith.constant 0 : index
    %11 = vector.load %arg2[%c1, %c0_7, %c0_8] : memref<6x128x128xbf16, #tpu.memory_space<vmem>>, vector<1x128x128xbf16>
    %12 = vector.shape_cast %11 : vector<1x128x128xbf16> to vector<128x128xbf16>
    %cst_9 = arith.constant dense<0.000000e+00> : vector<256x128xf32>
    %13 = tpu.matmul %10, %12, %cst_9 {dimension_numbers = #tpu.dot_dimension_numbers<[1], [0], [0], [1], [0, 0, 1, 1], [], []>} : vector<256x128xbf16>, vector<128x128xbf16>, vector<256x128xf32> -> vector<256x128xf32>
    %14 = arith.truncf %13 : vector<256x128xf32> to vector<256x128xbf16>
    %c1_10 = arith.constant 1 : index
    %c0_11 = arith.constant 0 : index
    %15 = vector.load %arg3[%c1_10, %c0_11] : memref<6x128xbf16, #tpu.memory_space<vmem>>, vector<1x128xbf16>
    %16 = vector.broadcast %15 : vector<1x128xbf16> to vector<256x128xbf16>
    %17 = arith.addf %14, %16 : vector<256x128xbf16>
    %cst_12 = arith.constant 0.000000e+00 : bf16
    %18 = vector.broadcast %cst_12 : bf16 to vector<256x128xbf16>
    %19 = arith.maximumf %17, %18 : vector<256x128xbf16>
    %c2 = arith.constant 2 : index
    %c0_13 = arith.constant 0 : index
    %c0_14 = arith.constant 0 : index
    %20 = vector.load %arg2[%c2, %c0_13, %c0_14] : memref<6x128x128xbf16, #tpu.memory_space<vmem>>, vector<1x128x128xbf16>
    %21 = vector.shape_cast %20 : vector<1x128x128xbf16> to vector<128x128xbf16>
    %cst_15 = arith.constant dense<0.000000e+00> : vector<256x128xf32>
    %22 = tpu.matmul %19, %21, %cst_15 {dimension_numbers = #tpu.dot_dimension_numbers<[1], [0], [0], [1], [0, 0, 1, 1], [], []>} : vector<256x128xbf16>, vector<128x128xbf16>, vector<256x128xf32> -> vector<256x128xf32>
    %23 = arith.truncf %22 : vector<256x128xf32> to vector<256x128xbf16>
    %c2_16 = arith.constant 2 : index
    %c0_17 = arith.constant 0 : index
    %24 = vector.load %arg3[%c2_16, %c0_17] : memref<6x128xbf16, #tpu.memory_space<vmem>>, vector<1x128xbf16>
    %25 = vector.broadcast %24 : vector<1x128xbf16> to vector<256x128xbf16>
    %26 = arith.addf %23, %25 : vector<256x128xbf16>
    %c3 = arith.constant 3 : index
    %c0_18 = arith.constant 0 : index
    %c0_19 = arith.constant 0 : index
    %27 = vector.load %arg2[%c3, %c0_18, %c0_19] : memref<6x128x128xbf16, #tpu.memory_space<vmem>>, vector<1x128x128xbf16>
    %28 = vector.shape_cast %27 : vector<1x128x128xbf16> to vector<128x128xbf16>
    %cst_20 = arith.constant dense<0.000000e+00> : vector<256x128xf32>
    %29 = tpu.matmul %26, %28, %cst_20 {dimension_numbers = #tpu.dot_dimension_numbers<[1], [0], [0], [1], [0, 0, 1, 1], [], []>} : vector<256x128xbf16>, vector<128x128xbf16>, vector<256x128xf32> -> vector<256x128xf32>
    %30 = arith.truncf %29 : vector<256x128xf32> to vector<256x128xbf16>
    %c3_21 = arith.constant 3 : index
    %c0_22 = arith.constant 0 : index
    %31 = vector.load %arg3[%c3_21, %c0_22] : memref<6x128xbf16, #tpu.memory_space<vmem>>, vector<1x128xbf16>
    %32 = vector.broadcast %31 : vector<1x128xbf16> to vector<256x128xbf16>
    %33 = arith.addf %30, %32 : vector<256x128xbf16>
    %cst_23 = arith.constant 0.000000e+00 : bf16
    %34 = vector.broadcast %cst_23 : bf16 to vector<256x128xbf16>
    %35 = arith.maximumf %33, %34 : vector<256x128xbf16>
    %c4 = arith.constant 4 : index
    %c0_24 = arith.constant 0 : index
    %c0_25 = arith.constant 0 : index
    %36 = vector.load %arg2[%c4, %c0_24, %c0_25] : memref<6x128x128xbf16, #tpu.memory_space<vmem>>, vector<1x128x128xbf16>
    %37 = vector.shape_cast %36 : vector<1x128x128xbf16> to vector<128x128xbf16>
    %cst_26 = arith.constant dense<0.000000e+00> : vector<256x128xf32>
    %38 = tpu.matmul %35, %37, %cst_26 {dimension_numbers = #tpu.dot_dimension_numbers<[1], [0], [0], [1], [0, 0, 1, 1], [], []>} : vector<256x128xbf16>, vector<128x128xbf16>, vector<256x128xf32> -> vector<256x128xf32>
    %39 = arith.truncf %38 : vector<256x128xf32> to vector<256x128xbf16>
    %c4_27 = arith.constant 4 : index
    %c0_28 = arith.constant 0 : index
    %40 = vector.load %arg3[%c4_27, %c0_28] : memref<6x128xbf16, #tpu.memory_space<vmem>>, vector<1x128xbf16>
    %41 = vector.broadcast %40 : vector<1x128xbf16> to vector<256x128xbf16>
    %42 = arith.addf %39, %41 : vector<256x128xbf16>
    %cst_29 = arith.constant 0.000000e+00 : bf16
    %43 = vector.broadcast %cst_29 : bf16 to vector<256x128xbf16>
    %44 = arith.maximumf %42, %43 : vector<256x128xbf16>
    %c5 = arith.constant 5 : index
    %c0_30 = arith.constant 0 : index
    %c0_31 = arith.constant 0 : index
    %45 = vector.load %arg2[%c5, %c0_30, %c0_31] : memref<6x128x128xbf16, #tpu.memory_space<vmem>>, vector<1x128x128xbf16>
    %46 = vector.shape_cast %45 : vector<1x128x128xbf16> to vector<128x128xbf16>
    %cst_32 = arith.constant dense<0.000000e+00> : vector<256x128xf32>
    %47 = tpu.matmul %44, %46, %cst_32 {dimension_numbers = #tpu.dot_dimension_numbers<[1], [0], [0], [1], [0, 0, 1, 1], [], []>} : vector<256x128xbf16>, vector<128x128xbf16>, vector<256x128xf32> -> vector<256x128xf32>
    %c5_33 = arith.constant 5 : index
    %c0_34 = arith.constant 0 : index
    %48 = vector.load %arg3[%c5_33, %c0_34] : memref<6x128xbf16, #tpu.memory_space<vmem>>, vector<1x128xbf16>
    %49 = arith.extf %48 : vector<1x128xbf16> to vector<1x128xf32>
    %50 = vector.broadcast %49 : vector<1x128xf32> to vector<256x128xf32>
    %51 = arith.addf %47, %50 : vector<256x128xf32>
    %52 = vector.extract_strided_slice %51 {offsets = [0, 0], sizes = [256, 8], strides = [1, 1]} : vector<256x128xf32> to vector<256x8xf32>
    %c0_35 = arith.constant 0 : index
    %c0_36 = arith.constant 0 : index
    %53 = vector.load %arg4[%c0_35, %c0_36] : memref<256x8xf32, #tpu.memory_space<vmem>>, vector<256x8xf32>
    tpu.vector_store %arg4[%c0_35, %c0_36], %52 {strides = array<i32>} : memref<256x8xf32, #tpu.memory_space<vmem>>, vector<256x8xf32>,
    return
  }
  func.func @transform_0(%arg0: i32) -> (i32, i32) {
    %c0_i32 = arith.constant 0 : i32
    %c0_i32_0 = arith.constant 0 : i32
    return %arg0, %c0_i32 : i32, i32
  }
  func.func @transform_1(%arg0: i32) -> (i32, i32, i32) {
    %c0_i32 = arith.constant 0 : i32
    %c0_i32_0 = arith.constant 0 : i32
    %c0_i32_1 = arith.constant 0 : i32
    %c0_i32_2 = arith.constant 0 : i32
    return %c0_i32, %c0_i32_0, %c0_i32_1 : i32, i32, i32
  }
  func.func @transform_2(%arg0: i32) -> (i32, i32) {
    %c0_i32 = arith.constant 0 : i32
    %c0_i32_0 = arith.constant 0 : i32
    %c0_i32_1 = arith.constant 0 : i32
    return %c0_i32, %c0_i32_0 : i32, i32
  }
  func.func @transform_3(%arg0: i32) -> (i32, i32) {
    %c0_i32 = arith.constant 0 : i32
    %c0_i32_0 = arith.constant 0 : i32
    return %arg0, %c0_i32 : i32, i32
  }
}

</mosaic_0001>

<bundles_post_ra>
// kernel: tpu_custom_call.1
= control target key start
LH: loop header
LB: loop body
LE: loop exit
PB: predicated region body
PF: predicated region fallthrough
CT: control target
= control target key end

     0   :  { %8 = vsyncpa [#allocation3], 0  ;;  %s2281_s12 = smov [#allocation2]   ;;  %s2780_s0 = inlined_call_operand.vmem [shape: f32[256,16], index: 0, kind: input, shape index: {}]   ;;  %s2781_s1 = inlined_call_operand.hbm [shape: bf16[6,128,128], index: 1, kind: input, shape index: {}]   ;;  %s2782_s2 = inlined_call_operand.vmem [shape: bf16[6,128], index: 2, kind: input, shape index: {}]   ;;  %s2783_s3 = inlined_call_operand.vmem [shape: f32[256,8], index: 3, kind: output, shape index: {}]  }
   0x1   :  { %s16_s13 = sshll.u32 %s2281_s12, 4  ;;  %s17_s13 = int_to_ptr.vmem [resolvable:$true] %s16_s13 }
   0x2   :  { %s2267_s14 = scalar_lea.vmem %s17_s13, 6144  ;;  %p2272_p1 = scmp.lt.s32.totalorder %s17_s13, %s17_s13 }
   0x3   :  { %p2268_p0 = scmp.ne.s32.totalorder %s17_s13, %s2267_s14  ;;  %p2273_p2 = scmp.lt.s32.totalorder %s2267_s14, %s2267_s14 }
   0x5   :  { %p2274_p3 = por %p2273_p2, %p2272_p1 }
   0x7   :  { %p2275_p4 = pnand %p2274_p3, %p2268_p0 }
   0x9   :  { %2278 = shalt.err (!%p2275_p4)
}
   0xa   :  { %s2282_s15 = smov 64   ;;  %s2283_s16 = smov 4  }
   0xb   :  { %22 = dma.hbm_to_vmem [thread:$0]  %s2781_s1, 6144, %s17_s13, [#allocation3], %s2282_s15, %s2282_s15, %s2283_s16  }
   0xc   :  { %2279 = dma.done.wait [#allocation3], 6144  }
   0xd   :  { %2280 = vsyncadd [#allocation3], 4294961152  ;;  %v2218_v0 = vld [vmem:[#allocation2] sm:$0xff]   ;;  %v30_v2 = vld [vmem:[%s2780_s0 + $0x8] sm:$0xff]  ;;  %vm85_vm0 = vcmask 130048   ;;  %vm1692_vm1 = vcmask 64512  }
   0xe   :  { %v29_v1 = vld [vmem:[%s2780_s0] sm:$0xff]  ;;  %v31_v3 = vld [vmem:[%s2780_s0 + $0x10] sm:$0xff]  ;;  %1924 = vmatprep.subr.bf16.mxu0 %v2218_v0  ;;  %v32_v5 = vld [vmem:[%s2780_s0 + $0x18] sm:$0xff] }
   0xf   :  { %v61_v4 = vpack.c.bf16 %v30_v2, %v29_v1  ;;  %v33_v6 = vld [vmem:[%s2780_s0 + $0x20] sm:$0xff]  ;;  %v34_v7 = vld [vmem:[%s2780_s0 + $0x28] sm:$0xff]  ;;  %1925 = vmatpush3.bf16.msra.mxu0 %v2218_v0  ;;  %v62_v8 = vpack.c.bf16 %v32_v5, %v31_v3  ;;  %v35_v10 = vld [vmem:[%s2780_s0 + $0x30] sm:$0xff]  ;;  %v315_v0 = vlaneseq }
  0x10   :  { %v63_v9 = vpack.c.bf16 %v34_v7, %v33_v6  ;;  %v36_v11 = vld [vmem:[%s2780_s0 + $0x38] sm:$0xff]  ;;  %v37_v12 = vld [vmem:[%s2780_s0 + $0x40] sm:$0xff]  ;;  %v38_v13 = vld [vmem:[%s2780_s0 + $0x48] sm:$0xff] }
  0x11   :  { %1926 = vmatprep.mubr.msk.bf16.mxu0 %vm85_vm0, %v61_v4  ;;  %v64_v14 = vpack.c.bf16 %v36_v11, %v35_v10  ;;  %v65_v15 = vpack.c.bf16 %v38_v13, %v37_v12  ;;  %v2219_v16 = vld [vmem:[#allocation2 + $0x78] sm:$0xff]   ;;  %v39_v17 = vld [vmem:[%s2780_s0 + $0x50] sm:$0xff]  ;;  %v41_v20 = vld [vmem:[%s2780_s0 + $0x60] sm:$0xff]  ;;  %v2420_v1 = vshrl.u32 %v315_v0, 7 }
  0x12   :  { %1927 = vmatmul.mubr.msk.bf16.vlgmr.msra.gmra.mxu0 %vm85_vm0, %v62_v8  ;;  %v40_v18 = vld [vmem:[%s2780_s0 + $0x58] sm:$0xff]  ;;  %v2220_v19 = vld [vmem:[#allocation2 + $0x70] sm:$0xff]   ;;  %1958 = vmatprep.subr.bf16.mxu1 %v2219_v16  ;;  %v42_v21 = vld [vmem:[%s2780_s0 + $0x68] sm:$0xff] }
  0x13   :  { %1930 = vmatprep.mubr.msk.bf16.mxu0 %vm85_vm0, %v63_v9  ;;  %1959 = vmatpush3.bf16.msra.mxu1 %v2219_v16  ;;  %v2221_v22 = vld [vmem:[#allocation2 + $0x68] sm:$0xff]   ;;  %v66_v23 = vpack.c.bf16 %v40_v18, %v39_v17  ;;  %v2222_v24 = vld [vmem:[#allocation2 + $0x60] sm:$0xff]   ;;  %v67_v25 = vpack.c.bf16 %v42_v21, %v41_v20  ;;  %v43_v26 = vld [vmem:[%s2780_s0 + $0x70] sm:$0xff]  ;;  %v317_v5 = vsub.s32 0, %v2420_v1  ;;  %v2284_v16 = vmov 0  }
  0x14   :  { %1960 = vmatprep.subr.bf16.mxu1 %v2220_v19  ;;  %v44_v27 = vld [vmem:[%s2780_s0 + $0x78] sm:$0xff]  ;;  %v45_v28 = vld [vmem:[%s2780_s0 + $0x80] sm:$0xff]  ;;  %v46_v29 = vld [vmem:[%s2780_s0 + $0x88] sm:$0xff] }
  0x15   :  { %v2223_v30 = vld [vmem:[#allocation2 + $0x58] sm:$0xff]   ;;  %v68_v31 = vpack.c.bf16 %v44_v27, %v43_v26  ;;  %v69_v32 = vpack.c.bf16 %v46_v29, %v45_v28  ;;  %v47_v33 = vld [vmem:[%s2780_s0 + $0x90] sm:$0xff]  ;;  %v49_v35 = vld [vmem:[%s2780_s0 + $0xa0] sm:$0xff] }
  0x16   :  { %v48_v34 = vld [vmem:[%s2780_s0 + $0x98] sm:$0xff]  ;;  %v50_v36 = vld [vmem:[%s2780_s0 + $0xa8] sm:$0xff]  ;;  %v51_v39 = vld [vmem:[%s2780_s0 + $0xb0] sm:$0xff] }
  0x17   :  { %1961 = vmatpush3.bf16.msra.mxu1 %v2220_v19  ;;  %v70_v37 = vpack.c.bf16 %v48_v34, %v47_v33  ;;  %v71_v38 = vpack.c.bf16 %v50_v36, %v49_v35  ;;  %v52_v40 = vld [vmem:[%s2780_s0 + $0xb8] sm:$0xff]  ;;  %v53_v41 = vld [vmem:[%s2780_s0 + $0xc0] sm:$0xff]  ;;  %v54_v42 = vld [vmem:[%s2780_s0 + $0xc8] sm:$0xff] }
  0x18   :  { %1962 = vmatprep.subr.bf16.mxu1 %v2221_v22  ;;  %v72_v43 = vpack.c.bf16 %v52_v40, %v51_v39  ;;  %v73_v44 = vpack.c.bf16 %v54_v42, %v53_v41  ;;  %v55_v45 = vld [vmem:[%s2780_s0 + $0xd0] sm:$0xff]  ;;  %v56_v46 = vld [vmem:[%s2780_s0 + $0xd8] sm:$0xff]  ;;  %v57_v47 = vld [vmem:[%s2780_s0 + $0xe0] sm:$0xff] }
  0x19   :  { %v58_v48 = vld [vmem:[%s2780_s0 + $0xe8] sm:$0xff]  ;;  %v74_v49 = vpack.c.bf16 %v56_v46, %v55_v45  ;;  %v59_v51 = vld [vmem:[%s2780_s0 + $0xf0] sm:$0xff]  ;;  %v60_v52 = vld [vmem:[%s2780_s0 + $0xf8] sm:$0xff] }
  0x1a   :  { %1931 = vmatmul.mubr.msk.bf16.gmra.mxu0 %vm85_vm0, %v64_v14  ;;  %v75_v50 = vpack.c.bf16 %v58_v48, %v57_v47  ;;  %v76_v53 = vpack.c.bf16 %v60_v52, %v59_v51  ;;  %v2224_v54 = vld [vmem:[#allocation2 + $0x50] sm:$0xff]   ;;  %v2225_v55 = vld [vmem:[#allocation2 + $0x48] sm:$0xff]   ;;  %v2226_v56 = vld [vmem:[#allocation2 + $0x40] sm:$0xff]  }
  0x1b   :  { %1934 = vmatprep.mubr.msk.bf16.mxu0 %vm85_vm0, %v65_v15  ;;  %1963 = vmatpush3.bf16.msra.mxu1 %v2221_v22  ;;  %v2227_v57 = vld [vmem:[#allocation2 + $0xb8] sm:$0xff]   ;;  %v2228_v58 = vld [vmem:[#allocation2 + $0xb0] sm:$0xff]   ;;  %v2229_v59 = vld [vmem:[#allocation2 + $0xa8] sm:$0xff]  }
  0x1c   :  { %1964 = vmatprep.subr.bf16.mxu1 %v2222_v24  ;;  %2006 = vmatprep.subr.bf16.mxu0 %v2227_v57  ;;  %v2230_v60 = vld [vmem:[#allocation2 + $0xa0] sm:$0xff]   ;;  %v2231_v61 = vld [vmem:[#allocation2 + $0x98] sm:$0xff]   ;;  %v2232_v62 = vld [vmem:[#allocation2 + $0x90] sm:$0xff]  }
  0x1d   :  { %2007 = vmatpush3.bf16.msra.mxu0 %v2227_v57  ;;  %v2233_v63 = vld [vmem:[#allocation2 + $0x88] sm:$0xff]   ;;  %v2425_v2 = vld [vmem:[%s2782_s2] sm:$0x1] }
  0x1e   :  { %2008 = vmatprep.subr.bf16.mxu0 %v2228_v58  ;;  %v313_v4 = vpack.i.b16 %v2425_v2, %v2425_v2 }
  0x1f   :  { %1965 = vmatpush3.bf16.msra.mxu1 %v2222_v24 }
  0x20   :  { %1966 = vmatprep.subr.bf16.mxu1 %v2223_v30  ;;  %v2432_v8 = vrot.slane %v313_v4, %v317_v5 }
  0x21   :  { %2009 = vmatpush3.bf16.msra.mxu0 %v2228_v58 }
  0x22   :  { %1935 = vmatmul.mubr.msk.bf16.gmra.mxu0 %vm85_vm0, %v66_v23  ;;  %2010 = vmatprep.subr.bf16.mxu0 %v2229_v59 }
  0x23   :  { %1938 = vmatprep.mubr.msk.bf16.mxu0 %vm85_vm0, %v67_v25  ;;  %1967 = vmatpush3.bf16.msra.mxu1 %v2223_v30 }
  0x24   :  { %1968 = vmatprep.subr.bf16.mxu1 %v2224_v54 }
  0x25   :  { %2011 = vmatpush3.bf16.msra.mxu0 %v2229_v59 }
  0x26   :  { %2012 = vmatprep.subr.bf16.mxu0 %v2230_v60 }
  0x27   :  { %1969 = vmatpush3.bf16.msra.mxu1 %v2224_v54 }
  0x28   :  { %1970 = vmatprep.subr.bf16.mxu1 %v2225_v55 }
  0x29   :  { %2013 = vmatpush3.bf16.msra.mxu0 %v2230_v60 }
  0x2a   :  { %1939 = vmatmul.mubr.msk.bf16.gmra.mxu0 %vm85_vm0, %v68_v31  ;;  %2014 = vmatprep.subr.bf16.mxu0 %v2231_v61 }
  0x2b   :  { %1942 = vmatprep.mubr.msk.bf16.mxu0 %vm85_vm0, %v69_v32  ;;  %1971 = vmatpush3.bf16.msra.mxu1 %v2225_v55 }
  0x2c   :  { %1972 = vmatprep.subr.bf16.mxu1 %v2226_v56 }
  0x2d   :  { %2015 = vmatpush3.bf16.msra.mxu0 %v2231_v61 }
  0x2e   :  { %2016 = vmatprep.subr.bf16.mxu0 %v2232_v62 }
  0x2f   :  { %1973 = vmatpush3.bf16.msra.mxu1 %v2226_v56 }
  0x31   :  { %2017 = vmatpush3.bf16.msra.mxu0 %v2232_v62 }
  0x32   :  { %1943 = vmatmul.mubr.msk.bf16.gmra.mxu0 %vm85_vm0, %v70_v37  ;;  %2018 = vmatprep.subr.bf16.mxu0 %v2233_v63 }
  0x33   :  { %1946 = vmatprep.mubr.msk.bf16.mxu0 %vm85_vm0, %v71_v38 }
  0x35   :  { %2019 = vmatpush3.bf16.msra.mxu0 %v2233_v63 }
  0x3a   :  { %1947 = vmatmul.mubr.msk.bf16.gmra.mxu0 %vm85_vm0, %v72_v43 }
  0x3b   :  { %1950 = vmatprep.mubr.msk.bf16.mxu0 %vm85_vm0, %v73_v44 }
  0x42   :  { %1951 = vmatmul.mubr.msk.bf16.gmra.mxu0 %vm85_vm0, %v74_v49 }
  0x43   :  { %1954 = vmatprep.mubr.msk.bf16.mxu0 %vm85_vm0, %v75_v50 }
  0x4a   :  { %1955 = vmatmul.mubr.msk.bf16.gmra.mxu0 %vm85_vm0, %v76_v53 }
  0xd2   :  { %v1928_v3 = vpop.f32.mrf.mxu0 }
  0xd4   :  { %v168_v6 = vpop.f32.mrf.mxu0 }
  0xd6   :  { %v1929_v7 = vpop.f32.mrf.mxu0 }
  0xd7   :  { %v296_v9 = vpack.c.bf16 %v1929_v7, %v1928_v3 }
  0xd8   :  { %v171_v10 = vpop.f32.mrf.mxu0 }
  0xd9   :  { %v295_v11 = vpack.c.bf16 %v171_v10, %v168_v6  ;;  %v320_v12 = vadd.bf16 %v2432_v8, %v296_v9 }
  0xda   :  { %v1932_v13 = vpop.f32.mrf.mxu0 }
  0xdb   :  { %v319_v14 = vadd.bf16 %v2432_v8, %v295_v11  ;;  %v336_v19 = vmax.bf16 %v2284_v16, %v320_v12 }
  0xdc   :  { %v184_v15 = vpop.f32.mrf.mxu0 }
  0xdd   :  { %v335_v17 = vmax.bf16 %v2284_v16, %v319_v14 }
  0xde   :  { %v1933_v18 = vpop.f32.mrf.mxu0 }
  0xdf   :  { %v298_v20 = vpack.c.bf16 %v1933_v18, %v1932_v13  ;;  %1974 = vmatprep.mubr.bf16.mxu1 %v335_v17 }
  0xe0   :  { %v187_v21 = vpop.f32.mrf.mxu0  ;;  %1975 = vmatmul.mubr.bf16.vlgmr.msra.gmra.mxu1 %v336_v19 }
  0xe1   :  { %v297_v22 = vpack.c.bf16 %v187_v21, %v184_v15  ;;  %v322_v23 = vadd.bf16 %v2432_v8, %v298_v20 }
  0xe2   :  { %v1936_v24 = vpop.f32.mrf.mxu0 }
  0xe3   :  { %v321_v25 = vadd.bf16 %v2432_v8, %v297_v22  ;;  %v338_v29 = vmax.bf16 %v2284_v16, %v322_v23 }
  0xe4   :  { %v200_v26 = vpop.f32.mrf.mxu0 }
  0xe5   :  { %v337_v27 = vmax.bf16 %v2284_v16, %v321_v25 }
  0xe6   :  { %v1937_v28 = vpop.f32.mrf.mxu0 }
  0xe7   :  { %v300_v30 = vpack.c.bf16 %v1937_v28, %v1936_v24  ;;  %1978 = vmatprep.mubr.bf16.mxu1 %v337_v27  ;;  %v2234_v28 = vld [vmem:[#allocation2 + $0x80] sm:$0xff]  }
  0xe8   :  { %v203_v31 = vpop.f32.mrf.mxu0  ;;  %1979 = vmatmul.mubr.bf16.gmra.mxu1 %v338_v29  ;;  %2020 = vmatprep.subr.bf16.mxu0 %v2234_v28  ;;  %v2235_v29 = vld [vmem:[#allocation2 + $0xf8] sm:$0xff]  }
  0xe9   :  { %v299_v32 = vpack.c.bf16 %v203_v31, %v200_v26  ;;  %v324_v33 = vadd.bf16 %v2432_v8, %v300_v30  ;;  %2021 = vmatpush3.bf16.msra.mxu0 %v2234_v28  ;;  %v2236_v30 = vld [vmem:[#allocation2 + $0xf0] sm:$0xff]   ;;  %2054 = vmatprep.subr.bf16.mxu1 %v2235_v29  ;;  %v2237_v31 = vld [vmem:[#allocation2 + $0xe8] sm:$0xff]  }
  0xea   :  { %v1940_v34 = vpop.f32.mrf.mxu0  ;;  %2055 = vmatpush3.bf16.msra.mxu1 %v2235_v29 }
  0xeb   :  { %v323_v35 = vadd.bf16 %v2432_v8, %v299_v32  ;;  %v340_v39 = vmax.bf16 %v2284_v16, %v324_v33  ;;  %2056 = vmatprep.subr.bf16.mxu1 %v2236_v30  ;;  %v2238_v32 = vld [vmem:[#allocation2 + $0xe0] sm:$0xff]   ;;  %v2240_v33 = vld [vmem:[#allocation2 + $0xd0] sm:$0xff]  }
  0xec   :  { %v216_v36 = vpop.f32.mrf.mxu0 }
  0xed   :  { %v339_v37 = vmax.bf16 %v2284_v16, %v323_v35  ;;  %v593_v35 = vshrl.u32 %v2425_v2, 16 }
  0xee   :  { %v1941_v38 = vpop.f32.mrf.mxu0  ;;  %2057 = vmatpush3.bf16.msra.mxu1 %v2236_v30 }
  0xef   :  { %v302_v40 = vpack.c.bf16 %v1941_v38, %v1940_v34  ;;  %1982 = vmatprep.mubr.bf16.mxu1 %v339_v37  ;;  %2058 = vmatprep.subr.bf16.mxu1 %v2237_v31  ;;  %v2241_v34 = vld [vmem:[#allocation2 + $0xc8] sm:$0xff]   ;;  %v594_v37 = vpack.i.b16 %v593_v35, %v593_v35 }
  0xf0   :  { %v219_v41 = vpop.f32.mrf.mxu0  ;;  %1983 = vmatmul.mubr.bf16.gmra.mxu1 %v340_v39 }
  0xf1   :  { %v301_v42 = vpack.c.bf16 %v219_v41, %v216_v36  ;;  %v326_v43 = vadd.bf16 %v2432_v8, %v302_v40  ;;  %v2469_v40 = vrot.slane %v594_v37, %v317_v5 }
  0xf2   :  { %v1944_v44 = vpop.f32.mrf.mxu0  ;;  %2059 = vmatpush3.bf16.msra.mxu1 %v2237_v31 }
  0xf3   :  { %v325_v45 = vadd.bf16 %v2432_v8, %v301_v42  ;;  %v342_v49 = vmax.bf16 %v2284_v16, %v326_v43  ;;  %2060 = vmatprep.subr.bf16.mxu1 %v2238_v32 }
  0xf4   :  { %v232_v46 = vpop.f32.mrf.mxu0 }
  0xf5   :  { %v341_v47 = vmax.bf16 %v2284_v16, %v325_v45 }
  0xf6   :  { %v1945_v48 = vpop.f32.mrf.mxu0  ;;  %2061 = vmatpush3.bf16.msra.mxu1 %v2238_v32 }
  0xf7   :  { %v304_v50 = vpack.c.bf16 %v1945_v48, %v1944_v44  ;;  %1986 = vmatprep.mubr.bf16.mxu1 %v341_v47 }
  0xf8   :  { %v235_v51 = vpop.f32.mrf.mxu0  ;;  %1987 = vmatmul.mubr.bf16.gmra.mxu1 %v342_v49 }
  0xf9   :  { %v303_v52 = vpack.c.bf16 %v235_v51, %v232_v46  ;;  %v328_v53 = vadd.bf16 %v2432_v8, %v304_v50 }
  0xfa   :  { %v1948_v54 = vpop.f32.mrf.mxu0 }
  0xfb   :  { %v327_v55 = vadd.bf16 %v2432_v8, %v303_v52  ;;  %v344_v59 = vmax.bf16 %v2284_v16, %v328_v53 }
  0xfc   :  { %v248_v56 = vpop.f32.mrf.mxu0 }
  0xfd   :  { %v343_v57 = vmax.bf16 %v2284_v16, %v327_v55 }
  0xfe   :  { %v1949_v58 = vpop.f32.mrf.mxu0 }
  0xff   :  { %v306_v60 = vpack.c.bf16 %v1949_v58, %v1948_v54  ;;  %1990 = vmatprep.mubr.bf16.mxu1 %v343_v57 }
 0x100   :  { %v251_v61 = vpop.f32.mrf.mxu0  ;;  %1991 = vmatmul.mubr.bf16.gmra.mxu1 %v344_v59 }
 0x101   :  { %v305_v62 = vpack.c.bf16 %v251_v61, %v248_v56  ;;  %v330_v63 = vadd.bf16 %v2432_v8, %v306_v60 }
 0x102   :  { %v1952_v0 = vpop.f32.mrf.mxu0 }
 0x103   :  { %v329_v3 = vadd.bf16 %v2432_v8, %v305_v62  ;;  %v346_v9 = vmax.bf16 %v2284_v16, %v330_v63 }
 0x104   :  { %v264_v4 = vpop.f32.mrf.mxu0 }
 0x105   :  { %v345_v6 = vmax.bf16 %v2284_v16, %v329_v3 }
 0x106   :  { %v1953_v7 = vpop.f32.mrf.mxu0 }
 0x107   :  { %v308_v10 = vpack.c.bf16 %v1953_v7, %v1952_v0  ;;  %1994 = vmatprep.mubr.bf16.mxu1 %v345_v6 }
 0x108   :  { %v267_v11 = vpop.f32.mrf.mxu0  ;;  %1995 = vmatmul.mubr.bf16.gmra.mxu1 %v346_v9 }
 0x109   :  { %v307_v12 = vpack.c.bf16 %v267_v11, %v264_v4  ;;  %v332_v13 = vadd.bf16 %v2432_v8, %v308_v10 }
 0x10a   :  { %v1956_v14 = vpop.f32.mrf.mxu0 }
 0x10b   :  { %v331_v15 = vadd.bf16 %v2432_v8, %v307_v12  ;;  %v348_v20 = vmax.bf16 %v2284_v16, %v332_v13 }
 0x10c   :  { %v280_v17 = vpop.f32.mrf.mxu0 }
 0x10d   :  { %v347_v18 = vmax.bf16 %v2284_v16, %v331_v15 }
 0x10e   :  { %v1957_v19 = vpop.f32.mrf.mxu0 }
 0x10f   :  { %v310_v21 = vpack.c.bf16 %v1957_v19, %v1956_v14  ;;  %1998 = vmatprep.mubr.bf16.mxu1 %v347_v18 }
 0x110   :  { %v283_v22 = vpop.f32.mrf.mxu0  ;;  %1999 = vmatmul.mubr.bf16.gmra.mxu1 %v348_v20 }
 0x111   :  { %v309_v23 = vpack.c.bf16 %v283_v22, %v280_v17  ;;  %v334_v24 = vadd.bf16 %v2432_v8, %v310_v21 }
 0x113   :  { %v333_v25 = vadd.bf16 %v2432_v8, %v309_v23  ;;  %v350_v27 = vmax.bf16 %v2284_v16, %v334_v24  ;;  %v2239_v8 = vld [vmem:[#allocation2 + $0xd8] sm:$0xff]  }
 0x114   :  { %2062 = vmatprep.subr.bf16.mxu1 %v2239_v8 }
 0x115   :  { %v349_v26 = vmax.bf16 %v2284_v16, %v333_v25  ;;  %2063 = vmatpush3.bf16.msra.mxu1 %v2239_v8 }
 0x116   :  { %2064 = vmatprep.subr.bf16.mxu1 %v2240_v33 }
 0x117   :  { %2002 = vmatprep.mubr.bf16.mxu1 %v349_v26 }
 0x118   :  { %2003 = vmatmul.mubr.bf16.gmra.mxu1 %v350_v27 }
 0x119   :  { %2065 = vmatpush3.bf16.msra.mxu1 %v2240_v33 }
 0x11a   :  { %2066 = vmatprep.subr.bf16.mxu1 %v2241_v34 }
 0x11d   :  { %2067 = vmatpush3.bf16.msra.mxu1 %v2241_v34 }
 0x1a0   :  { %v1976_v36 = vpop.f32.mrf.mxu1 }
 0x1a2   :  { %v450_v38 = vpop.f32.mrf.mxu1 }
 0x1a4   :  { %v1977_v39 = vpop.f32.mrf.mxu1 }
 0x1a5   :  { %v578_v41 = vpack.c.bf16 %v1977_v39, %v1976_v36 }
 0x1a6   :  { %v453_v42 = vpop.f32.mrf.mxu1 }
 0x1a7   :  { %v577_v43 = vpack.c.bf16 %v453_v42, %v450_v38  ;;  %v601_v44 = vadd.bf16 %v2469_v40, %v578_v41 }
 0x1a8   :  { %v1980_v45 = vpop.f32.mrf.mxu1 }
 0x1a9   :  { %v600_v46 = vadd.bf16 %v2469_v40, %v577_v43  ;;  %v617_v2 = vmax.bf16 %v2284_v16, %v601_v44 }
 0x1aa   :  { %v466_v47 = vpop.f32.mrf.mxu1 }
 0x1ab   :  { %v616_v48 = vmax.bf16 %v2284_v16, %v600_v46 }
 0x1ac   :  { %v1981_v49 = vpop.f32.mrf.mxu1 }
 0x1ad   :  { %v580_v50 = vpack.c.bf16 %v1981_v49, %v1980_v45  ;;  %2022 = vmatprep.mubr.bf16.mxu0 %v616_v48 }
 0x1ae   :  { %v469_v51 = vpop.f32.mrf.mxu1  ;;  %2023 = vmatmul.mubr.bf16.vlgmr.msra.gmra.mxu0 %v617_v2 }
 0x1af   :  { %v579_v5 = vpack.c.bf16 %v469_v51, %v466_v47  ;;  %v603_v52 = vadd.bf16 %v2469_v40, %v580_v50 }
 0x1b0   :  { %v1984_v53 = vpop.f32.mrf.mxu1 }
 0x1b1   :  { %v602_v54 = vadd.bf16 %v2469_v40, %v579_v5  ;;  %v619_v58 = vmax.bf16 %v2284_v16, %v603_v52 }
 0x1b2   :  { %v482_v55 = vpop.f32.mrf.mxu1 }
 0x1b3   :  { %v618_v56 = vmax.bf16 %v2284_v16, %v602_v54 }
 0x1b4   :  { %v1985_v57 = vpop.f32.mrf.mxu1 }
 0x1b5   :  { %v582_v59 = vpack.c.bf16 %v1985_v57, %v1984_v53  ;;  %2026 = vmatprep.mubr.bf16.mxu0 %v618_v56  ;;  %v2243_v56 = vld [vmem:[#allocation2 + $0x138] sm:$0xff]   ;;  %v2244_v57 = vld [vmem:[#allocation2 + $0x130] sm:$0xff]  }
 0x1b6   :  { %v485_v60 = vpop.f32.mrf.mxu1  ;;  %2027 = vmatmul.mubr.bf16.gmra.mxu0 %v619_v58  ;;  %2102 = vmatprep.subr.bf16.mxu0 %v2243_v56  ;;  %v2245_v58 = vld [vmem:[#allocation2 + $0x128] sm:$0xff]  }
 0x1b7   :  { %v581_v61 = vpack.c.bf16 %v485_v60, %v482_v55  ;;  %v605_v62 = vadd.bf16 %v2469_v40, %v582_v59  ;;  %v2242_v55 = vld [vmem:[#allocation2 + $0xc0] sm:$0xff]   ;;  %2103 = vmatpush3.bf16.msra.mxu0 %v2243_v56  ;;  %v2248_v60 = vld [vmem:[#allocation2 + $0x110] sm:$0xff]  }
 0x1b8   :  { %v1988_v63 = vpop.f32.mrf.mxu1  ;;  %2068 = vmatprep.subr.bf16.mxu1 %v2242_v55  ;;  %2104 = vmatprep.subr.bf16.mxu0 %v2244_v57  ;;  %v2246_v59 = vld [vmem:[#allocation2 + $0x120] sm:$0xff]  }
 0x1b9   :  { %v604_v0 = vadd.bf16 %v2469_v40, %v581_v61  ;;  %v621_v7 = vmax.bf16 %v2284_v16, %v605_v62  ;;  %2069 = vmatpush3.bf16.msra.mxu1 %v2242_v55  ;;  %v2249_v61 = vld [vmem:[#allocation2 + $0x108] sm:$0xff]   ;;  %v2506_v62 = vld [vmem:[%s2782_s2] sm:$0x2] }
 0x1ba   :  { %v498_v3 = vpop.f32.mrf.mxu1 }
 0x1bb   :  { %v620_v4 = vmax.bf16 %v2284_v16, %v604_v0  ;;  %2105 = vmatpush3.bf16.msra.mxu0 %v2244_v57 }
 0x1bc   :  { %v1989_v6 = vpop.f32.mrf.mxu1  ;;  %2106 = vmatprep.subr.bf16.mxu0 %v2245_v58 }
 0x1bd   :  { %v584_v9 = vpack.c.bf16 %v1989_v6, %v1988_v63  ;;  %2030 = vmatprep.mubr.bf16.mxu0 %v620_v4  ;;  %v880_v4 = vsub.s32 1, %v2420_v1 }
 0x1be   :  { %v501_v10 = vpop.f32.mrf.mxu1  ;;  %2031 = vmatmul.mubr.bf16.gmra.mxu0 %v621_v7 }
 0x1bf   :  { %v583_v11 = vpack.c.bf16 %v501_v10, %v498_v3  ;;  %v607_v12 = vadd.bf16 %v2469_v40, %v584_v9  ;;  %2107 = vmatpush3.bf16.msra.mxu0 %v2245_v58  ;;  %v876_v3 = vpack.i.b16 %v2506_v62, %v2506_v62 }
 0x1c0   :  { %v1992_v13 = vpop.f32.mrf.mxu1  ;;  %2108 = vmatprep.subr.bf16.mxu0 %v2246_v59 }
 0x1c1   :  { %v606_v14 = vadd.bf16 %v2469_v40, %v583_v11  ;;  %v623_v19 = vmax.bf16 %v2284_v16, %v607_v12  ;;  %v2513_v9 = vrot.slane %v876_v3, %v880_v4 }
 0x1c2   :  { %v514_v15 = vpop.f32.mrf.mxu1 }
 0x1c3   :  { %v622_v17 = vmax.bf16 %v2284_v16, %v606_v14  ;;  %2109 = vmatpush3.bf16.msra.mxu0 %v2246_v59 }
 0x1c4   :  { %v1993_v18 = vpop.f32.mrf.mxu1 }
 0x1c5   :  { %v586_v20 = vpack.c.bf16 %v1993_v18, %v1992_v13  ;;  %2034 = vmatprep.mubr.bf16.mxu0 %v622_v17 }
 0x1c6   :  { %v517_v21 = vpop.f32.mrf.mxu1  ;;  %2035 = vmatmul.mubr.bf16.gmra.mxu0 %v623_v19 }
 0x1c7   :  { %v585_v22 = vpack.c.bf16 %v517_v21, %v514_v15  ;;  %v609_v23 = vadd.bf16 %v2469_v40, %v586_v20 }
 0x1c8   :  { %v1996_v24 = vpop.f32.mrf.mxu1 }
 0x1c9   :  { %v608_v25 = vadd.bf16 %v2469_v40, %v585_v22  ;;  %v625_v29 = vmax.bf16 %v2284_v16, %v609_v23 }
 0x1ca   :  { %v530_v26 = vpop.f32.mrf.mxu1 }
 0x1cb   :  { %v624_v27 = vmax.bf16 %v2284_v16, %v608_v25 }
 0x1cc   :  { %v1997_v28 = vpop.f32.mrf.mxu1 }
 0x1cd   :  { %v588_v30 = vpack.c.bf16 %v1997_v28, %v1996_v24  ;;  %2038 = vmatprep.mubr.bf16.mxu0 %v624_v27 }
 0x1ce   :  { %v533_v31 = vpop.f32.mrf.mxu1  ;;  %2039 = vmatmul.mubr.bf16.gmra.mxu0 %v625_v29 }
 0x1cf   :  { %v587_v32 = vpack.c.bf16 %v533_v31, %v530_v26  ;;  %v611_v8 = vadd.bf16 %v2469_v40, %v588_v30 }
 0x1d0   :  { %v2000_v33 = vpop.f32.mrf.mxu1 }
 0x1d1   :  { %v610_v34 = vadd.bf16 %v2469_v40, %v587_v32  ;;  %v627_v38 = vmax.bf16 %v2284_v16, %v611_v8 }
 0x1d2   :  { %v546_v35 = vpop.f32.mrf.mxu1 }
 0x1d3   :  { %v626_v36 = vmax.bf16 %v2284_v16, %v610_v34 }
 0x1d4   :  { %v2001_v37 = vpop.f32.mrf.mxu1 }
 0x1d5   :  { %v590_v39 = vpack.c.bf16 %v2001_v37, %v2000_v33  ;;  %2042 = vmatprep.mubr.bf16.mxu0 %v626_v36 }
 0x1d6   :  { %v549_v41 = vpop.f32.mrf.mxu1  ;;  %2043 = vmatmul.mubr.bf16.gmra.mxu0 %v627_v38 }
 0x1d7   :  { %v589_v42 = vpack.c.bf16 %v549_v41, %v546_v35  ;;  %v613_v43 = vadd.bf16 %v2469_v40, %v590_v39 }
 0x1d8   :  { %v2004_v44 = vpop.f32.mrf.mxu1 }
 0x1d9   :  { %v612_v45 = vadd.bf16 %v2469_v40, %v589_v42  ;;  %v629_v2 = vmax.bf16 %v2284_v16, %v613_v43 }
 0x1da   :  { %v562_v46 = vpop.f32.mrf.mxu1 }
 0x1db   :  { %v628_v47 = vmax.bf16 %v2284_v16, %v612_v45 }
 0x1dc   :  { %v2005_v48 = vpop.f32.mrf.mxu1 }
 0x1dd   :  { %v592_v49 = vpack.c.bf16 %v2005_v48, %v2004_v44  ;;  %2046 = vmatprep.mubr.bf16.mxu0 %v628_v47 }
 0x1de   :  { %v565_v50 = vpop.f32.mrf.mxu1  ;;  %2047 = vmatmul.mubr.bf16.gmra.mxu0 %v629_v2 }
 0x1df   :  { %v591_v51 = vpack.c.bf16 %v565_v50, %v562_v46  ;;  %v615_v5 = vadd.bf16 %v2469_v40, %v592_v49 }
 0x1e1   :  { %v614_v52 = vadd.bf16 %v2469_v40, %v591_v51  ;;  %v631_v54 = vmax.bf16 %v2284_v16, %v615_v5  ;;  %v2247_v40 = vld [vmem:[#allocation2 + $0x118] sm:$0xff]  }
 0x1e2   :  { %2110 = vmatprep.subr.bf16.mxu0 %v2247_v40 }
 0x1e3   :  { %v630_v53 = vmax.bf16 %v2284_v16, %v614_v52  ;;  %2111 = vmatpush3.bf16.msra.mxu0 %v2247_v40 }
 0x1e4   :  { %2112 = vmatprep.subr.bf16.mxu0 %v2248_v60 }
 0x1e5   :  { %2050 = vmatprep.mubr.bf16.mxu0 %v630_v53 }
 0x1e6   :  { %2051 = vmatmul.mubr.bf16.gmra.mxu0 %v631_v54 }
 0x1e7   :  { %2113 = vmatpush3.bf16.msra.mxu0 %v2248_v60 }
 0x1e8   :  { %2114 = vmatprep.subr.bf16.mxu0 %v2249_v61 }
 0x1eb   :  { %2115 = vmatpush3.bf16.msra.mxu0 %v2249_v61 }
 0x26e   :  { %v2024_v63 = vpop.f32.mrf.mxu0 }
 0x270   :  { %v731_v0 = vpop.f32.mrf.mxu0 }
 0x272   :  { %v2025_v6 = vpop.f32.mrf.mxu0 }
 0x273   :  { %v859_v7 = vpack.c.bf16 %v2025_v6, %v2024_v63 }
 0x274   :  { %v734_v10 = vpop.f32.mrf.mxu0 }
 0x275   :  { %v858_v11 = vpack.c.bf16 %v734_v10, %v731_v0  ;;  %v883_v14 = vadd.bf16 %v2513_v9, %v859_v7 }
 0x276   :  { %v2028_v12 = vpop.f32.mrf.mxu0 }
 0x277   :  { %v882_v13 = vadd.bf16 %v2513_v9, %v858_v11  ;;  %v2250_v11 = vld [vmem:[#allocation2 + $0x100] sm:$0xff]  }
 0x278   :  { %v747_v15 = vpop.f32.mrf.mxu0  ;;  %2116 = vmatprep.subr.bf16.mxu0 %v2250_v11 }
 0x279   :  { %2070 = vmatprep.mubr.bf16.mxu1 %v882_v13  ;;  %2117 = vmatpush3.bf16.msra.mxu0 %v2250_v11  ;;  %v2252_v13 = vld [vmem:[#allocation2 + $0x170] sm:$0xff]  }
 0x27a   :  { %v2029_v17 = vpop.f32.mrf.mxu0  ;;  %2071 = vmatmul.mubr.bf16.vlgmr.msra.gmra.mxu1 %v883_v14  ;;  %v2253_v14 = vld [vmem:[#allocation2 + $0x168] sm:$0xff]  }
 0x27b   :  { %v861_v18 = vpack.c.bf16 %v2029_v17, %v2028_v12  ;;  %v2251_v12 = vld [vmem:[#allocation2 + $0x178] sm:$0xff]  }
 0x27c   :  { %v750_v19 = vpop.f32.mrf.mxu0  ;;  %2198 = vmatprep.subr.bf16.mxu1 %v2251_v12  ;;  %2150 = vmatprep.subr.bf16.mxu0 %v2251_v12  ;;  %v2255_v17 = vld [vmem:[#allocation2 + $0x158] sm:$0xff]  }
 0x27d   :  { %v860_v20 = vpack.c.bf16 %v750_v19, %v747_v15  ;;  %v885_v23 = vadd.bf16 %v2513_v9, %v861_v18  ;;  %2206 = vmatpush3.bf16.msra.mxu1 %v2251_v12  ;;  %v2254_v15 = vld [vmem:[#allocation2 + $0x160] sm:$0xff]   ;;  %v1140_v18 = vshrl.u32 %v2506_v62, 16 }
 0x27e   :  { %v2032_v21 = vpop.f32.mrf.mxu0  ;;  %2199 = vmatprep.subr.bf16.mxu1 %v2252_v13 }
 0x27f   :  { %v884_v22 = vadd.bf16 %v2513_v9, %v860_v20  ;;  %v1141_v20 = vpack.i.b16 %v1140_v18, %v1140_v18 }
 0x280   :  { %v763_v24 = vpop.f32.mrf.mxu0 }
 0x281   :  { %2074 = vmatprep.mubr.bf16.mxu1 %v884_v22  ;;  %2207 = vmatpush3.bf16.msra.mxu1 %v2252_v13 }
 0x282   :  { %v2033_v25 = vpop.f32.mrf.mxu0  ;;  %2075 = vmatmul.mubr.bf16.gmra.mxu1 %v885_v23  ;;  %2200 = vmatprep.subr.bf16.mxu1 %v2253_v14  ;;  %v2538_v23 = vrot.slane %v1141_v20, %v880_v4 }
 0x283   :  { %v863_v26 = vpack.c.bf16 %v2033_v25, %v2032_v21 }
 0x284   :  { %v766_v27 = vpop.f32.mrf.mxu0 }
 0x285   :  { %v862_v28 = vpack.c.bf16 %v766_v27, %v763_v24  ;;  %v887_v31 = vadd.bf16 %v2513_v9, %v863_v26  ;;  %2208 = vmatpush3.bf16.msra.mxu1 %v2253_v14 }
 0x286   :  { %v2036_v29 = vpop.f32.mrf.mxu0  ;;  %2201 = vmatprep.subr.bf16.mxu1 %v2254_v15 }
 0x287   :  { %v886_v30 = vadd.bf16 %v2513_v9, %v862_v28 }
 0x288   :  { %v779_v32 = vpop.f32.mrf.mxu0 }
 0x289   :  { %2078 = vmatprep.mubr.bf16.mxu1 %v886_v30  ;;  %2209 = vmatpush3.bf16.msra.mxu1 %v2254_v15 }
 0x28a   :  { %v2037_v8 = vpop.f32.mrf.mxu0  ;;  %2079 = vmatmul.mubr.bf16.gmra.mxu1 %v887_v31  ;;  %2202 = vmatprep.subr.bf16.mxu1 %v2255_v17 }
 0x28b   :  { %v865_v33 = vpack.c.bf16 %v2037_v8, %v2036_v29 }
 0x28c   :  { %v782_v34 = vpop.f32.mrf.mxu0 }
 0x28d   :  { %v864_v35 = vpack.c.bf16 %v782_v34, %v779_v32  ;;  %v889_v38 = vadd.bf16 %v2513_v9, %v865_v33  ;;  %2210 = vmatpush3.bf16.msra.mxu1 %v2255_v17 }
 0x28e   :  { %v2040_v36 = vpop.f32.mrf.mxu0 }
 0x28f   :  { %v888_v37 = vadd.bf16 %v2513_v9, %v864_v35 }
 0x290   :  { %v795_v39 = vpop.f32.mrf.mxu0 }
 0x291   :  { %2082 = vmatprep.mubr.bf16.mxu1 %v888_v37 }
 0x292   :  { %v2041_v41 = vpop.f32.mrf.mxu0  ;;  %2083 = vmatmul.mubr.bf16.gmra.mxu1 %v889_v38 }
 0x293   :  { %v867_v42 = vpack.c.bf16 %v2041_v41, %v2040_v36 }
 0x294   :  { %v798_v43 = vpop.f32.mrf.mxu0 }
 0x295   :  { %v866_v44 = vpack.c.bf16 %v798_v43, %v795_v39  ;;  %v891_v47 = vadd.bf16 %v2513_v9, %v867_v42 }
 0x296   :  { %v2044_v45 = vpop.f32.mrf.mxu0 }
 0x297   :  { %v890_v46 = vadd.bf16 %v2513_v9, %v866_v44 }
 0x298   :  { %v811_v48 = vpop.f32.mrf.mxu0 }
 0x299   :  { %2086 = vmatprep.mubr.bf16.mxu1 %v890_v46 }
 0x29a   :  { %v2045_v2 = vpop.f32.mrf.mxu0  ;;  %2087 = vmatmul.mubr.bf16.gmra.mxu1 %v891_v47 }
 0x29b   :  { %v869_v49 = vpack.c.bf16 %v2045_v2, %v2044_v45 }
 0x29c   :  { %v814_v50 = vpop.f32.mrf.mxu0 }
 0x29d   :  { %v868_v51 = vpack.c.bf16 %v814_v50, %v811_v48  ;;  %v893_v53 = vadd.bf16 %v2513_v9, %v869_v49 }
 0x29e   :  { %v2048_v5 = vpop.f32.mrf.mxu0 }
 0x29f   :  { %v892_v52 = vadd.bf16 %v2513_v9, %v868_v51 }
 0x2a0   :  { %v827_v54 = vpop.f32.mrf.mxu0 }
 0x2a1   :  { %2090 = vmatprep.mubr.bf16.mxu1 %v892_v52 }
 0x2a2   :  { %v2049_v55 = vpop.f32.mrf.mxu0  ;;  %2091 = vmatmul.mubr.bf16.gmra.mxu1 %v893_v53 }
 0x2a3   :  { %v871_v56 = vpack.c.bf16 %v2049_v55, %v2048_v5 }
 0x2a4   :  { %v830_v57 = vpop.f32.mrf.mxu0 }
 0x2a5   :  { %v870_v58 = vpack.c.bf16 %v830_v57, %v827_v54  ;;  %v895_v60 = vadd.bf16 %v2513_v9, %v871_v56 }
 0x2a6   :  { %v2052_v59 = vpop.f32.mrf.mxu0 }
 0x2a7   :  { %v894_v40 = vadd.bf16 %v2513_v9, %v870_v58 }
 0x2a8   :  { %v843_v61 = vpop.f32.mrf.mxu0 }
 0x2a9   :  { %2094 = vmatprep.mubr.bf16.mxu1 %v894_v40 }
 0x2aa   :  { %v2053_v63 = vpop.f32.mrf.mxu0  ;;  %2095 = vmatmul.mubr.bf16.gmra.mxu1 %v895_v60 }
 0x2ab   :  { %v873_v0 = vpack.c.bf16 %v2053_v63, %v2052_v59 }
 0x2ac   :  { %v846_v3 = vpop.f32.mrf.mxu0 }
 0x2ad   :  { %v872_v6 = vpack.c.bf16 %v846_v3, %v843_v61  ;;  %v897_v10 = vadd.bf16 %v2513_v9, %v873_v0 }
 0x2af   :  { %v896_v7 = vadd.bf16 %v2513_v9, %v872_v6  ;;  %v2531_v9 = vld [vmem:[#allocation2 + $0x150] sm:$0xff]  }
 0x2b0   :  { %2203 = vmatprep.subr.bf16.mxu1 %v2531_v9 }
 0x2b1   :  { %2098 = vmatprep.mubr.bf16.mxu1 %v896_v7  ;;  %2211 = vmatpush3.bf16.msra.mxu1 %v2531_v9 }
 0x2b2   :  { %2099 = vmatmul.mubr.bf16.gmra.mxu1 %v897_v10 }
 0x33a   :  { %v2072_v19 = vpop.f32.mrf.mxu1 }
 0x33c   :  { %v997_v21 = vpop.f32.mrf.mxu1 }
 0x33e   :  { %v2073_v22 = vpop.f32.mrf.mxu1 }
 0x33f   :  { %v1125_v24 = vpack.c.bf16 %v2073_v22, %v2072_v19 }
 0x340   :  { %v1000_v25 = vpop.f32.mrf.mxu1 }
 0x341   :  { %v1124_v26 = vpack.c.bf16 %v1000_v25, %v997_v21  ;;  %v1148_v27 = vadd.bf16 %v2538_v23, %v1125_v24 }
 0x342   :  { %v2076_v28 = vpop.f32.mrf.mxu1 }
 0x343   :  { %v1147_v29 = vadd.bf16 %v2538_v23, %v1124_v26  ;;  %v1164_v62 = vmax.bf16 %v2284_v16, %v1148_v27 }
 0x344   :  { %v1013_v30 = vpop.f32.mrf.mxu1 }
 0x345   :  { %v1163_v31 = vmax.bf16 %v2284_v16, %v1147_v29 }
 0x346   :  { %v2077_v32 = vpop.f32.mrf.mxu1 }
 0x347   :  { %v1127_v8 = vpack.c.bf16 %v2077_v32, %v2076_v28  ;;  %2118 = vmatprep.mubr.bf16.mxu0 %v1163_v31 }
 0x348   :  { %v1016_v33 = vpop.f32.mrf.mxu1  ;;  %2119 = vmatmul.mubr.bf16.vlgmr.msra.gmra.mxu0 %v1164_v62 }
 0x349   :  { %v1126_v4 = vpack.c.bf16 %v1016_v33, %v1013_v30  ;;  %2151 = vmatpush3.bf16.msra.mxu0 %v2251_v12  ;;  %v1150_v34 = vadd.bf16 %v2538_v23, %v1127_v8 }
 0x34a   :  { %v2080_v35 = vpop.f32.mrf.mxu1  ;;  %2152 = vmatprep.subr.bf16.mxu0 %v2252_v13 }
 0x34b   :  { %v1149_v36 = vadd.bf16 %v2538_v23, %v1126_v4  ;;  %v1166_v41 = vmax.bf16 %v2284_v16, %v1150_v34 }
 0x34c   :  { %v1029_v37 = vpop.f32.mrf.mxu1 }
 0x34d   :  { %v1165_v38 = vmax.bf16 %v2284_v16, %v1149_v36  ;;  %2153 = vmatpush3.bf16.msra.mxu0 %v2252_v13 }
 0x34e   :  { %v2081_v39 = vpop.f32.mrf.mxu1  ;;  %2154 = vmatprep.subr.bf16.mxu0 %v2253_v14 }
 0x34f   :  { %v1129_v42 = vpack.c.bf16 %v2081_v39, %v2080_v35  ;;  %2122 = vmatprep.mubr.bf16.mxu0 %v1165_v38  ;;  %v2258_v38 = vld [vmem:[#allocation2 + $0x140] sm:$0xff]  }
 0x350   :  { %v1032_v43 = vpop.f32.mrf.mxu1  ;;  %2123 = vmatmul.mubr.bf16.gmra.mxu0 %v1166_v41 }
 0x351   :  { %v1128_v44 = vpack.c.bf16 %v1032_v43, %v1029_v37  ;;  %2155 = vmatpush3.bf16.msra.mxu0 %v2253_v14  ;;  %v1152_v45 = vadd.bf16 %v2538_v23, %v1129_v42  ;;  %v2257_v37 = vld [vmem:[#allocation2 + $0x148] sm:$0xff]   ;;  %v1427_v42 = vsub.s32 2, %v2420_v1 }
 0x352   :  { %v2084_v46 = vpop.f32.mrf.mxu1  ;;  %2156 = vmatprep.subr.bf16.mxu0 %v2254_v15  ;;  %2204 = vmatprep.subr.bf16.mxu1 %v2257_v37 }
 0x353   :  { %v1151_v47 = vadd.bf16 %v2538_v23, %v1128_v44  ;;  %v1168_v50 = vmax.bf16 %v2284_v16, %v1152_v45  ;;  %2212 = vmatpush3.bf16.msra.mxu1 %v2257_v37 }
 0x354   :  { %v1045_v48 = vpop.f32.mrf.mxu1  ;;  %2205 = vmatprep.subr.bf16.mxu1 %v2258_v38 }
 0x355   :  { %v1167_v2 = vmax.bf16 %v2284_v16, %v1151_v47  ;;  %2157 = vmatpush3.bf16.msra.mxu0 %v2254_v15 }
 0x356   :  { %v2085_v49 = vpop.f32.mrf.mxu1  ;;  %2158 = vmatprep.subr.bf16.mxu0 %v2255_v17 }
 0x357   :  { %v1131_v51 = vpack.c.bf16 %v2085_v49, %v2084_v46  ;;  %2126 = vmatprep.mubr.bf16.mxu0 %v1167_v2  ;;  %2213 = vmatpush3.bf16.msra.mxu1 %v2258_v38 }
 0x358   :  { %v1048_v5 = vpop.f32.mrf.mxu1  ;;  %2127 = vmatmul.mubr.bf16.gmra.mxu0 %v1168_v50 }
 0x359   :  { %v1130_v52 = vpack.c.bf16 %v1048_v5, %v1045_v48  ;;  %2159 = vmatpush3.bf16.msra.mxu0 %v2255_v17  ;;  %v1154_v53 = vadd.bf16 %v2538_v23, %v1131_v51 }
 0x35a   :  { %v2088_v54 = vpop.f32.mrf.mxu1  ;;  %2160 = vmatprep.subr.bf16.mxu0 %v2531_v9 }
 0x35b   :  { %v1153_v55 = vadd.bf16 %v2538_v23, %v1130_v52  ;;  %v1170_v59 = vmax.bf16 %v2284_v16, %v1154_v53 }
 0x35c   :  { %v1061_v56 = vpop.f32.mrf.mxu1 }
 0x35d   :  { %v1169_v57 = vmax.bf16 %v2284_v16, %v1153_v55  ;;  %2161 = vmatpush3.bf16.msra.mxu0 %v2531_v9 }
 0x35e   :  { %v2089_v58 = vpop.f32.mrf.mxu1  ;;  %2162 = vmatprep.subr.bf16.mxu0 %v2257_v37 }
 0x35f   :  { %v1133_v40 = vpack.c.bf16 %v2089_v58, %v2088_v54  ;;  %2130 = vmatprep.mubr.bf16.mxu0 %v1169_v57 }
 0x360   :  { %v1064_v60 = vpop.f32.mrf.mxu1  ;;  %2131 = vmatmul.mubr.bf16.gmra.mxu0 %v1170_v59 }
 0x361   :  { %v1132_v61 = vpack.c.bf16 %v1064_v60, %v1061_v56  ;;  %v1156_v63 = vadd.bf16 %v2538_v23, %v1133_v40  ;;  %2163 = vmatpush3.bf16.msra.mxu0 %v2257_v37 }
 0x362   :  { %v2092_v0 = vpop.f32.mrf.mxu1  ;;  %2164 = vmatprep.subr.bf16.mxu0 %v2258_v38 }
 0x363   :  { %v1155_v3 = vadd.bf16 %v2538_v23, %v1132_v61  ;;  %v1172_v11 = vmax.bf16 %v2284_v16, %v1156_v63 }
 0x364   :  { %v1077_v6 = vpop.f32.mrf.mxu1 }
 0x365   :  { %v1171_v7 = vmax.bf16 %v2284_v16, %v1155_v3  ;;  %2165 = vmatpush3.bf16.msra.mxu0 %v2258_v38 }
 0x366   :  { %v2093_v10 = vpop.f32.mrf.mxu1 }
 0x367   :  { %v1135_v12 = vpack.c.bf16 %v2093_v10, %v2092_v0  ;;  %2134 = vmatprep.mubr.bf16.mxu0 %v1171_v7 }
 0x368   :  { %v1080_v13 = vpop.f32.mrf.mxu1  ;;  %2135 = vmatmul.mubr.bf16.gmra.mxu0 %v1172_v11 }
 0x369   :  { %v1134_v14 = vpack.c.bf16 %v1080_v13, %v1077_v6  ;;  %v1158_v15 = vadd.bf16 %v2538_v23, %v1135_v12 }
 0x36a   :  { %v2096_v17 = vpop.f32.mrf.mxu1 }
 0x36b   :  { %v1157_v9 = vadd.bf16 %v2538_v23, %v1134_v14  ;;  %v1174_v21 = vmax.bf16 %v2284_v16, %v1158_v15 }
 0x36c   :  { %v1093_v18 = vpop.f32.mrf.mxu1 }
 0x36d   :  { %v1173_v19 = vmax.bf16 %v2284_v16, %v1157_v9 }
 0x36e   :  { %v2097_v20 = vpop.f32.mrf.mxu1 }
 0x36f   :  { %v1137_v22 = vpack.c.bf16 %v2097_v20, %v2096_v17  ;;  %2138 = vmatprep.mubr.bf16.mxu0 %v1173_v19 }
 0x370   :  { %v1096_v24 = vpop.f32.mrf.mxu1  ;;  %2139 = vmatmul.mubr.bf16.gmra.mxu0 %v1174_v21 }
 0x371   :  { %v1136_v25 = vpack.c.bf16 %v1096_v24, %v1093_v18  ;;  %v1160_v26 = vadd.bf16 %v2538_v23, %v1137_v22 }
 0x372   :  { %v2100_v27 = vpop.f32.mrf.mxu1 }
 0x373   :  { %v1159_v28 = vadd.bf16 %v2538_v23, %v1136_v25  ;;  %v1176_v62 = vmax.bf16 %v2284_v16, %v1160_v26 }
 0x374   :  { %v1109_v29 = vpop.f32.mrf.mxu1 }
 0x375   :  { %v1175_v30 = vmax.bf16 %v2284_v16, %v1159_v28 }
 0x376   :  { %v2101_v31 = vpop.f32.mrf.mxu1 }
 0x377   :  { %v1139_v32 = vpack.c.bf16 %v2101_v31, %v2100_v27  ;;  %2142 = vmatprep.mubr.bf16.mxu0 %v1175_v30 }
 0x378   :  { %v1112_v8 = vpop.f32.mrf.mxu1  ;;  %2143 = vmatmul.mubr.bf16.gmra.mxu0 %v1176_v62 }
 0x379   :  { %v1138_v33 = vpack.c.bf16 %v1112_v8, %v1109_v29  ;;  %v1162_v4 = vadd.bf16 %v2538_v23, %v1139_v32 }
 0x37b   :  { %v1161_v34 = vadd.bf16 %v2538_v23, %v1138_v33  ;;  %v1178_v36 = vmax.bf16 %v2284_v16, %v1162_v4  ;;  %v2577_v23 = vld [vmem:[%s2782_s2] sm:$0x4] }
 0x37c   :  { %v1423_v41 = vpack.i.b16 %v2577_v23, %v2577_v23 }
 0x37d   :  { %v1177_v35 = vmax.bf16 %v2284_v16, %v1161_v34 }
 0x37e   :  { %v2582_v45 = vrot.slane %v1423_v41, %v1427_v42 }
 0x37f   :  { %2146 = vmatprep.mubr.bf16.mxu0 %v1177_v35 }
 0x380   :  { %2147 = vmatmul.mubr.bf16.gmra.mxu0 %v1178_v36 }
 0x408   :  { %v2120_v39 = vpop.f32.mrf.mxu0 }
 0x40a   :  { %v1278_v43 = vpop.f32.mrf.mxu0 }
 0x40c   :  { %v2121_v44 = vpop.f32.mrf.mxu0 }
 0x40d   :  { %v1406_v46 = vpack.c.bf16 %v2121_v44, %v2120_v39 }
 0x40e   :  { %v1281_v47 = vpop.f32.mrf.mxu0 }
 0x40f   :  { %v1405_v48 = vpack.c.bf16 %v1281_v47, %v1278_v43  ;;  %v1430_v2 = vadd.bf16 %v2582_v45, %v1406_v46 }
 0x410   :  { %v2124_v49 = vpop.f32.mrf.mxu0 }
 0x411   :  { %v1429_v50 = vadd.bf16 %v2582_v45, %v1405_v48  ;;  %v1446_v52 = vmax.bf16 %v2284_v16, %v1430_v2 }
 0x412   :  { %v1294_v51 = vpop.f32.mrf.mxu0 }
 0x413   :  { %v1445_v5 = vmax.bf16 %v2284_v16, %v1429_v50 }
 0x414   :  { %v2125_v53 = vpop.f32.mrf.mxu0 }
 0x415   :  { %v1408_v54 = vpack.c.bf16 %v2125_v53, %v2124_v49  ;;  %2166 = vmatprep.mubr.bf16.mxu0 %v1445_v5 }
 0x416   :  { %v1297_v55 = vpop.f32.mrf.mxu0  ;;  %2167 = vmatmul.mubr.bf16.vlgmr.msra.gmra.mxu0 %v1446_v52 }
 0x417   :  { %v1407_v56 = vpack.c.bf16 %v1297_v55, %v1294_v51  ;;  %v1432_v57 = vadd.bf16 %v2582_v45, %v1408_v54 }
 0x418   :  { %v2128_v58 = vpop.f32.mrf.mxu0 }
 0x419   :  { %v1431_v59 = vadd.bf16 %v2582_v45, %v1407_v56  ;;  %v1448_v61 = vmax.bf16 %v2284_v16, %v1432_v57 }
 0x41a   :  { %v1310_v40 = vpop.f32.mrf.mxu0 }
 0x41b   :  { %v1447_v60 = vmax.bf16 %v2284_v16, %v1431_v59 }
 0x41c   :  { %v2129_v63 = vpop.f32.mrf.mxu0 }
 0x41d   :  { %v1410_v0 = vpack.c.bf16 %v2129_v63, %v2128_v58  ;;  %2170 = vmatprep.mubr.bf16.mxu1 %v1447_v60  ;;  %v1481_v60 = vsub.s32 5, %v2420_v1 }
 0x41e   :  { %v1313_v3 = vpop.f32.mrf.mxu0  ;;  %2171 = vmatmul.mubr.bf16.vlgmr.msra.gmra.mxu1 %v1448_v61  ;;  %v1478_v61 = vunpack.c.l.bf16 %v2577_v23 }
 0x41f   :  { %v1409_v6 = vpack.c.bf16 %v1313_v3, %v1310_v40  ;;  %v1434_v7 = vadd.bf16 %v2582_v45, %v1410_v0 }
 0x420   :  { %v2132_v10 = vpop.f32.mrf.mxu0  ;;  %v2618_v63 = vrot.slane %v1478_v61, %v1481_v60 }
 0x421   :  { %v1433_v11 = vadd.bf16 %v2582_v45, %v1409_v6  ;;  %v1450_v15 = vmax.bf16 %v2284_v16, %v1434_v7 }
 0x422   :  { %v1326_v12 = vpop.f32.mrf.mxu0 }
 0x423   :  { %v1449_v13 = vmax.bf16 %v2284_v16, %v1433_v11 }
 0x424   :  { %v2133_v14 = vpop.f32.mrf.mxu0 }
 0x425   :  { %v1412_v17 = vpack.c.bf16 %v2133_v14, %v2132_v10  ;;  %2174 = vmatprep.mubr.bf16.mxu1 %v1449_v13 }
 0x426   :  { %v1329_v9 = vpop.f32.mrf.mxu0  ;;  %2175 = vmatmul.mubr.bf16.gmra.mxu1 %v1450_v15 }
 0x427   :  { %v1411_v18 = vpack.c.bf16 %v1329_v9, %v1326_v12  ;;  %v1436_v19 = vadd.bf16 %v2582_v45, %v1412_v17 }
 0x428   :  { %v2136_v20 = vpop.f32.mrf.mxu0 }
 0x429   :  { %v1435_v21 = vadd.bf16 %v2582_v45, %v1411_v18  ;;  %v1452_v26 = vmax.bf16 %v2284_v16, %v1436_v19 }
 0x42a   :  { %v1342_v22 = vpop.f32.mrf.mxu0 }
 0x42b   :  { %v1451_v24 = vmax.bf16 %v2284_v16, %v1435_v21 }
 0x42c   :  { %v2137_v25 = vpop.f32.mrf.mxu0 }
 0x42d   :  { %v1414_v27 = vpack.c.bf16 %v2137_v25, %v2136_v20  ;;  %2178 = vmatprep.mubr.bf16.mxu1 %v1451_v24 }
 0x42e   :  { %v1345_v28 = vpop.f32.mrf.mxu0  ;;  %2179 = vmatmul.mubr.bf16.gmra.mxu1 %v1452_v26 }
 0x42f   :  { %v1413_v29 = vpack.c.bf16 %v1345_v28, %v1342_v22  ;;  %v1438_v30 = vadd.bf16 %v2582_v45, %v1414_v27 }
 0x430   :  { %v2140_v31 = vpop.f32.mrf.mxu0 }
 0x431   :  { %v1437_v62 = vadd.bf16 %v2582_v45, %v1413_v29  ;;  %v1454_v4 = vmax.bf16 %v2284_v16, %v1438_v30 }
 0x432   :  { %v1358_v32 = vpop.f32.mrf.mxu0 }
 0x433   :  { %v1453_v8 = vmax.bf16 %v2284_v16, %v1437_v62 }
 0x434   :  { %v2141_v33 = vpop.f32.mrf.mxu0 }
 0x435   :  { %v1416_v34 = vpack.c.bf16 %v2141_v33, %v2140_v31  ;;  %2182 = vmatprep.mubr.bf16.mxu1 %v1453_v8 }
 0x436   :  { %v1361_v35 = vpop.f32.mrf.mxu0  ;;  %2183 = vmatmul.mubr.bf16.gmra.mxu1 %v1454_v4 }
 0x437   :  { %v1415_v36 = vpack.c.bf16 %v1361_v35, %v1358_v32  ;;  %v1440_v37 = vadd.bf16 %v2582_v45, %v1416_v34 }
 0x438   :  { %v2144_v38 = vpop.f32.mrf.mxu0 }
 0x439   :  { %v1439_v39 = vadd.bf16 %v2582_v45, %v1415_v36  ;;  %v1456_v44 = vmax.bf16 %v2284_v16, %v1440_v37 }
 0x43a   :  { %v1374_v41 = vpop.f32.mrf.mxu0 }
 0x43b   :  { %v1455_v42 = vmax.bf16 %v2284_v16, %v1439_v39 }
 0x43c   :  { %v2145_v43 = vpop.f32.mrf.mxu0 }
 0x43d   :  { %v1418_v46 = vpack.c.bf16 %v2145_v43, %v2144_v38  ;;  %2186 = vmatprep.mubr.bf16.mxu1 %v1455_v42 }
 0x43e   :  { %v1377_v47 = vpop.f32.mrf.mxu0  ;;  %2187 = vmatmul.mubr.bf16.gmra.mxu1 %v1456_v44 }
 0x43f   :  { %v1417_v48 = vpack.c.bf16 %v1377_v47, %v1374_v41  ;;  %v1442_v2 = vadd.bf16 %v2582_v45, %v1418_v46 }
 0x440   :  { %v2148_v49 = vpop.f32.mrf.mxu0 }
 0x441   :  { %v1441_v50 = vadd.bf16 %v2582_v45, %v1417_v48  ;;  %v1458_v53 = vmax.bf16 %v2284_v16, %v1442_v2 }
 0x442   :  { %v1390_v51 = vpop.f32.mrf.mxu0 }
 0x443   :  { %v1457_v5 = vmax.bf16 %v2284_v16, %v1441_v50 }
 0x444   :  { %v2149_v52 = vpop.f32.mrf.mxu0 }
 0x445   :  { %v1420_v54 = vpack.c.bf16 %v2149_v52, %v2148_v49  ;;  %2190 = vmatprep.mubr.bf16.mxu1 %v1457_v5 }
 0x446   :  { %v1393_v55 = vpop.f32.mrf.mxu0  ;;  %2191 = vmatmul.mubr.bf16.gmra.mxu1 %v1458_v53 }
 0x447   :  { %v1419_v56 = vpack.c.bf16 %v1393_v55, %v1390_v51  ;;  %v1444_v57 = vadd.bf16 %v2582_v45, %v1420_v54 }
 0x449   :  { %v1443_v58 = vadd.bf16 %v2582_v45, %v1419_v56  ;;  %v1460_v40 = vmax.bf16 %v2284_v16, %v1444_v57 }
 0x44b   :  { %v1459_v59 = vmax.bf16 %v2284_v16, %v1443_v58 }
 0x44d   :  { %2194 = vmatprep.mubr.bf16.mxu1 %v1459_v59 }
 0x44e   :  { %2195 = vmatmul.mubr.bf16.gmra.mxu1 %v1460_v40 }
 0x4d6   :  { %v2168_v0 = vpop.f32.mrf.mxu0 }
 0x4d7   :  { %v1574_v3 = vadd.f32 %v2168_v0, %v2618_v63 }
 0x4d8   :  { %v1565_v6 = vpop.f32.mrf.mxu0 }
 0x4d9   :  { %1695 = vst.msk [vmem:[%s2783_s3 + $0x10] sm:$0xff] %vm1692_vm1, %v1574_v3  ;;  %v1566_v16 = vadd.f32 %v1565_v6, %v2618_v63 }
 0x4da   :  { %v2169_v45 = vpop.f32.mrf.mxu0 }
 0x4db   :  { %1693 = vst.msk [vmem:[%s2783_s3] sm:$0xff] %vm1692_vm1, %v1566_v16  ;;  %v1577_v1 = vadd.f32 %v2169_v45, %v2618_v63 }
 0x4dc   :  { %v1568_v23 = vpop.f32.mrf.mxu0 }
 0x4dd   :  { %1696 = vst.msk [vmem:[%s2783_s3 + $0x18] sm:$0xff] %vm1692_vm1, %v1577_v1  ;;  %v1569_v7 = vadd.f32 %v1568_v23, %v2618_v63 }
 0x4de   :  { %v2172_v10 = vpop.f32.mrf.mxu1 }
 0x4df   :  { %1694 = vst.msk [vmem:[%s2783_s3 + $0x8] sm:$0xff] %vm1692_vm1, %v1569_v7  ;;  %v1590_v11 = vadd.f32 %v2172_v10, %v2618_v63 }
 0x4e0   :  { %v1581_v12 = vpop.f32.mrf.mxu1 }
 0x4e1   :  { %1699 = vst.msk [vmem:[%s2783_s3 + $0x30] sm:$0xff] %vm1692_vm1, %v1590_v11  ;;  %v1582_v13 = vadd.f32 %v1581_v12, %v2618_v63 }
 0x4e2   :  { %v2173_v14 = vpop.f32.mrf.mxu1 }
 0x4e3   :  { %1697 = vst.msk [vmem:[%s2783_s3 + $0x20] sm:$0xff] %vm1692_vm1, %v1582_v13  ;;  %v1593_v15 = vadd.f32 %v2173_v14, %v2618_v63 }
 0x4e4   :  { %v1584_v17 = vpop.f32.mrf.mxu1 }
 0x4e5   :  { %1700 = vst.msk [vmem:[%s2783_s3 + $0x38] sm:$0xff] %vm1692_vm1, %v1593_v15  ;;  %v1585_v9 = vadd.f32 %v1584_v17, %v2618_v63 }
 0x4e6   :  { %v2176_v18 = vpop.f32.mrf.mxu1 }
 0x4e7   :  { %1698 = vst.msk [vmem:[%s2783_s3 + $0x28] sm:$0xff] %vm1692_vm1, %v1585_v9  ;;  %v1606_v19 = vadd.f32 %v2176_v18, %v2618_v63 }
 0x4e8   :  { %v1597_v20 = vpop.f32.mrf.mxu1 }
 0x4e9   :  { %1703 = vst.msk [vmem:[%s2783_s3 + $0x50] sm:$0xff] %vm1692_vm1, %v1606_v19  ;;  %v1598_v21 = vadd.f32 %v1597_v20, %v2618_v63 }
 0x4ea   :  { %v2177_v22 = vpop.f32.mrf.mxu1 }
 0x4eb   :  { %1701 = vst.msk [vmem:[%s2783_s3 + $0x40] sm:$0xff] %vm1692_vm1, %v1598_v21  ;;  %v1609_v24 = vadd.f32 %v2177_v22, %v2618_v63 }
 0x4ec   :  { %v1600_v25 = vpop.f32.mrf.mxu1 }
 0x4ed   :  { %1704 = vst.msk [vmem:[%s2783_s3 + $0x58] sm:$0xff] %vm1692_vm1, %v1609_v24  ;;  %v1601_v26 = vadd.f32 %v1600_v25, %v2618_v63 }
 0x4ee   :  { %v2180_v27 = vpop.f32.mrf.mxu1 }
 0x4ef   :  { %1702 = vst.msk [vmem:[%s2783_s3 + $0x48] sm:$0xff] %vm1692_vm1, %v1601_v26  ;;  %v1622_v28 = vadd.f32 %v2180_v27, %v2618_v63 }
 0x4f0   :  { %v1613_v29 = vpop.f32.mrf.mxu1 }
 0x4f1   :  { %1707 = vst.msk [vmem:[%s2783_s3 + $0x70] sm:$0xff] %vm1692_vm1, %v1622_v28  ;;  %v1614_v30 = vadd.f32 %v1613_v29, %v2618_v63 }
 0x4f2   :  { %v2181_v31 = vpop.f32.mrf.mxu1 }
 0x4f3   :  { %1705 = vst.msk [vmem:[%s2783_s3 + $0x60] sm:$0xff] %vm1692_vm1, %v1614_v30  ;;  %v1625_v62 = vadd.f32 %v2181_v31, %v2618_v63 }
 0x4f4   :  { %v1616_v32 = vpop.f32.mrf.mxu1 }
 0x4f5   :  { %1708 = vst.msk [vmem:[%s2783_s3 + $0x78] sm:$0xff] %vm1692_vm1, %v1625_v62  ;;  %v1617_v8 = vadd.f32 %v1616_v32, %v2618_v63 }
 0x4f6   :  { %v2184_v33 = vpop.f32.mrf.mxu1 }
 0x4f7   :  { %1706 = vst.msk [vmem:[%s2783_s3 + $0x68] sm:$0xff] %vm1692_vm1, %v1617_v8  ;;  %v1638_v4 = vadd.f32 %v2184_v33, %v2618_v63 }
 0x4f8   :  { %v1629_v34 = vpop.f32.mrf.mxu1 }
 0x4f9   :  { %1711 = vst.msk [vmem:[%s2783_s3 + $0x90] sm:$0xff] %vm1692_vm1, %v1638_v4  ;;  %v1630_v35 = vadd.f32 %v1629_v34, %v2618_v63 }
 0x4fa   :  { %v2185_v36 = vpop.f32.mrf.mxu1 }
 0x4fb   :  { %1709 = vst.msk [vmem:[%s2783_s3 + $0x80] sm:$0xff] %vm1692_vm1, %v1630_v35  ;;  %v1641_v37 = vadd.f32 %v2185_v36, %v2618_v63 }
 0x4fc   :  { %v1632_v38 = vpop.f32.mrf.mxu1 }
 0x4fd   :  { %1712 = vst.msk [vmem:[%s2783_s3 + $0x98] sm:$0xff] %vm1692_vm1, %v1641_v37  ;;  %v1633_v39 = vadd.f32 %v1632_v38, %v2618_v63 }
 0x4fe   :  { %v2188_v41 = vpop.f32.mrf.mxu1 }
 0x4ff   :  { %1710 = vst.msk [vmem:[%s2783_s3 + $0x88] sm:$0xff] %vm1692_vm1, %v1633_v39  ;;  %v1654_v42 = vadd.f32 %v2188_v41, %v2618_v63 }
 0x500   :  { %v1645_v43 = vpop.f32.mrf.mxu1 }
 0x501   :  { %1715 = vst.msk [vmem:[%s2783_s3 + $0xb0] sm:$0xff] %vm1692_vm1, %v1654_v42  ;;  %v1646_v44 = vadd.f32 %v1645_v43, %v2618_v63 }
 0x502   :  { %v2189_v46 = vpop.f32.mrf.mxu1 }
 0x503   :  { %1713 = vst.msk [vmem:[%s2783_s3 + $0xa0] sm:$0xff] %vm1692_vm1, %v1646_v44  ;;  %v1657_v47 = vadd.f32 %v2189_v46, %v2618_v63 }
 0x504   :  { %v1648_v48 = vpop.f32.mrf.mxu1 }
 0x505   :  { %1716 = vst.msk [vmem:[%s2783_s3 + $0xb8] sm:$0xff] %vm1692_vm1, %v1657_v47  ;;  %v1649_v2 = vadd.f32 %v1648_v48, %v2618_v63 }
 0x506   :  { %v2192_v49 = vpop.f32.mrf.mxu1 }
 0x507   :  { %1714 = vst.msk [vmem:[%s2783_s3 + $0xa8] sm:$0xff] %vm1692_vm1, %v1649_v2  ;;  %v1670_v50 = vadd.f32 %v2192_v49, %v2618_v63 }
 0x508   :  { %v1661_v51 = vpop.f32.mrf.mxu1 }
 0x509   :  { %1719 = vst.msk [vmem:[%s2783_s3 + $0xd0] sm:$0xff] %vm1692_vm1, %v1670_v50  ;;  %v1662_v5 = vadd.f32 %v1661_v51, %v2618_v63 }
 0x50a   :  { %v2193_v52 = vpop.f32.mrf.mxu1 }
 0x50b   :  { %1717 = vst.msk [vmem:[%s2783_s3 + $0xc0] sm:$0xff] %vm1692_vm1, %v1662_v5  ;;  %v1673_v53 = vadd.f32 %v2193_v52, %v2618_v63 }
 0x50c   :  { %v1664_v54 = vpop.f32.mrf.mxu1 }
 0x50d   :  { %1720 = vst.msk [vmem:[%s2783_s3 + $0xd8] sm:$0xff] %vm1692_vm1, %v1673_v53  ;;  %v1665_v55 = vadd.f32 %v1664_v54, %v2618_v63 }
 0x50e   :  { %v2196_v56 = vpop.f32.mrf.mxu1 }
 0x50f   :  { %1718 = vst.msk [vmem:[%s2783_s3 + $0xc8] sm:$0xff] %vm1692_vm1, %v1665_v55  ;;  %v1686_v57 = vadd.f32 %v2196_v56, %v2618_v63 }
 0x510   :  { %v1677_v58 = vpop.f32.mrf.mxu1 }
 0x511   :  { %1723 = vst.msk [vmem:[%s2783_s3 + $0xf0] sm:$0xff] %vm1692_vm1, %v1686_v57  ;;  %v1678_v59 = vadd.f32 %v1677_v58, %v2618_v63 }
 0x512   :  { %v2197_v40 = vpop.f32.mrf.mxu1 }
 0x513   :  { %1721 = vst.msk [vmem:[%s2783_s3 + $0xe0] sm:$0xff] %vm1692_vm1, %v1678_v59  ;;  %v1689_v60 = vadd.f32 %v2197_v40, %v2618_v63 }
 0x514   :  { %v1680_v61 = vpop.f32.mrf.mxu1 }
 0x515   :  { %1724 = vst.msk [vmem:[%s2783_s3 + $0xf8] sm:$0xff] %vm1692_vm1, %v1689_v60  ;;  %v1681_v0 = vadd.f32 %v1680_v61, %v2618_v63 }
 0x517   :  { %1722 = vst.msk [vmem:[%s2783_s3 + $0xe8] sm:$0xff] %vm1692_vm1, %v1681_v0 }
 0x518   :  { %1729 = vsyncpa [#allocation3], 1 }

</bundles_post_ra>
